<compile_context>
chip_gen: v7x
topology: tpu7x:2x2x1
jax: 0.10.0
libtpu: 0.0.40
codegen_flags: <defaults>
</compile_context>

<pallas_src>
import jax
import jax.numpy as jnp
from jax.experimental import pallas as pl
from jax.experimental.pallas import tpu as pltpu


_TARGET_BLOCK_BYTES = 4 << 20   # ~4 MiB per block -> ~24 MiB pipelined footprint
_VMEM_LIMIT_BYTES = 32 << 20    # raise v5e's 16 MiB default; <= physical on all chips


def _gated_residual_kernel(alpha_ref, x_ref, sub_ref, out_ref):
    """out = x + alpha * sublayer_out for one (tm, L) tile, in native dtype."""
    alpha = alpha_ref[0].astype(x_ref.dtype)   # scalar read from SMEM
    out_ref[...] = x_ref[...] + alpha * sub_ref[...]


def _pick_lane_width(total_elems: int, last_dim: int) -> int:
    """Widest lane-dense (multiple-of-128) width dividing the element count."""
    if total_elems % 128 == 0:
        for cand in (2048, 1024, 512, 256, 128):
            if total_elems % cand == 0:
                return cand
    # Fallback: original last dim.  A full-extent last dim is always a legal
    # block dimension even when it is not a multiple of 128.
    return last_dim


def gated_residual(x: jax.Array, sublayer_out: jax.Array, alpha,
                   *, donate_x: bool = False,
                   target_block_bytes: int = _TARGET_BLOCK_BYTES) -> jax.Array:
    """Fused Pallas implementation of x + alpha * sublayer_out."""
    assert x.shape == sublayer_out.shape, "x and sublayer_out must match"
    # Output takes x.dtype (matches PyTorch promotion for a 0-d float alpha).
    sublayer_out = sublayer_out.astype(x.dtype)

    orig_shape = x.shape
    n_elems = x.size
    last_dim = orig_shape[-1] if x.ndim > 0 else 1

    # Lane-dense 2-D view of the element stream (op is purely elementwise).
    lane = _pick_lane_width(n_elems, last_dim)
    rows = n_elems // lane
    x2 = x.reshape(rows, lane)
    s2 = sublayer_out.reshape(rows, lane)

    # Row tile from a byte budget, rounded to the dtype's sublane multiple.
    itemsize = jnp.dtype(x.dtype).itemsize
    sublane = max(8, 32 // itemsize)            # 8 (f32) / 16 (bf16) / 32 (int8)
    tm = max(sublane, target_block_bytes // (lane * itemsize))
    tm = (tm // sublane) * sublane
    if rows <= tm:
        tm = rows                               # single full-extent block
    grid = (pl.cdiv(rows, tm),)

    alpha_arr = jnp.asarray(alpha, dtype=jnp.float32).reshape((1,))

    extra = {}
    if donate_x:
        # Alias x (input index 1: alpha is 0) onto the output buffer.
        extra["input_output_aliases"] = {1: 0}

    out2 = pl.pallas_call(
        _gated_residual_kernel,
        out_shape=jax.ShapeDtypeStruct((rows, lane), x.dtype),
        grid=grid,
        in_specs=[
            # Scalar alpha lives in SMEM — untiled, no vector DMA.
            pl.BlockSpec(memory_space=pltpu.MemorySpace.SMEM),
            pl.BlockSpec((tm, lane), lambda i: (i, 0)),
            pl.BlockSpec((tm, lane), lambda i: (i, 0)),
        ],
        out_specs=pl.BlockSpec((tm, lane), lambda i: (i, 0)),
        compiler_params=pltpu.CompilerParams(
            # Rows are independent -> megacore / dual-TC parallel on v7x.
            dimension_semantics=("parallel",),
            vmem_limit_bytes=_VMEM_LIMIT_BYTES,
        ),
        **extra,
    )(alpha_arr, x2, s2)

    return out2.reshape(orig_shape)


class GatedResidual:
    """JAX/Pallas port of the PyTorch GatedResidual module.

    alpha is a scalar parameter initialized to 0.5 (matching the reference;
    `dim` is accepted for API parity but unused, as in the PyTorch module).
    """

    def __init__(self, dim):
        del dim  # reference module ignores it for the parameter shape
        self.alpha = jnp.float32(0.5)

    def forward(self, x, sublayer_out):
        return gated_residual(x, sublayer_out, self.alpha)

    __call__ = forward


if __name__ == "__main__":
    key = jax.random.PRNGKey(0)
    k1, k2, k3, k4 = jax.random.split(key, 4)

    # --- Primary check: transformer-residual-like shape (batch, seq, dim) ---
    batch, seq, dim = 2, 8, 128
    x = jax.random.normal(k1, (batch, seq, dim), dtype=jnp.float32)
    sub = jax.random.normal(k2, (batch, seq, dim), dtype=jnp.float32)

    module = GatedResidual(dim)
    out = jax.block_until_ready(module(x, sub))

    ref = x + 0.5 * sub
    assert out.shape == x.shape and out.dtype == x.dtype
    assert jnp.allclose(out, ref, rtol=1e-6, atol=1e-6), "f32 mismatch vs reference"

    # --- Multi-block / odd-last-dim path (tiny byte budget forces grid > 1,
    #     non-128 last dim exercises the full-extent-lane fallback + partial
    #     final block masking) ---
    xb = jax.random.normal(k3, (7, 41, 24), dtype=jnp.float32)
    sb = jax.random.normal(k4, (7, 41, 24), dtype=jnp.float32)
    out_b = jax.block_until_ready(
        gated_residual(xb, sb, jnp.float32(0.5), target_block_bytes=4096))
    assert jnp.allclose(out_b, xb + 0.5 * sb, rtol=1e-6, atol=1e-6), \
        "multi-block mismatch vs reference"

    # --- bf16 native-compute path (no f32 casts inside the kernel) ---
    xh = x.astype(jnp.bfloat16)
    sh = sub.astype(jnp.bfloat16)
    out_h = jax.block_until_ready(module(xh, sh))
    ref_h = xh + jnp.bfloat16(0.5) * sh
    assert out_h.dtype == jnp.bfloat16
    assert jnp.allclose(out_h.astype(jnp.float32), ref_h.astype(jnp.float32),
                        rtol=1e-2, atol=1e-2), "bf16 mismatch vs reference"

    print("KERNEL_OK")
</pallas_src>

<mosaic_0001>
module attributes {stable_mosaic.version = 11 : i64} {
  func.func @_gated_residual_kernel(%arg0: i32, %arg1: memref<1xf32, #tpu.memory_space<smem>>, %arg2: memref<1x2048xf32, #tpu.memory_space<vmem>>, %arg3: memref<1x2048xf32, #tpu.memory_space<vmem>>, %arg4: memref<1x2048xf32, #tpu.memory_space<vmem>>) attributes {dimension_semantics = [#tpu.dimension_semantics<parallel>], iteration_bounds = array<i64: 1>, scalar_prefetch = 0 : i64, scratch_operands = 0 : i64, tpu.core_type = #tpu.core_type<tc>, window_params = [{transform_indices = @transform_0, window_bounds = array<i64: 1>}, {transform_indices = @transform_1, window_bounds = array<i64: 1, 2048>}, {transform_indices = @transform_2, window_bounds = array<i64: 1, 2048>}, {transform_indices = @transform_3, window_bounds = array<i64: 1, 2048>}]} {
    %c0 = arith.constant 0 : index
    %0 = memref.load %arg1[%c0] : memref<1xf32, #tpu.memory_space<smem>>
    %c0_0 = arith.constant 0 : index
    %c0_1 = arith.constant 0 : index
    %1 = vector.load %arg2[%c0_0, %c0_1] : memref<1x2048xf32, #tpu.memory_space<vmem>>, vector<1x2048xf32>
    %c0_2 = arith.constant 0 : index
    %c0_3 = arith.constant 0 : index
    %2 = vector.load %arg3[%c0_2, %c0_3] : memref<1x2048xf32, #tpu.memory_space<vmem>>, vector<1x2048xf32>
    %3 = vector.broadcast %0 : f32 to vector<1x2048xf32>
    %4 = arith.mulf %3, %2 : vector<1x2048xf32>
    %5 = arith.addf %1, %4 : vector<1x2048xf32>
    %c0_4 = arith.constant 0 : index
    %c0_5 = arith.constant 0 : index
    %6 = vector.load %arg4[%c0_4, %c0_5] : memref<1x2048xf32, #tpu.memory_space<vmem>>, vector<1x2048xf32>
    tpu.vector_store %arg4[%c0_4, %c0_5], %5 {strides = array<i32>} : memref<1x2048xf32, #tpu.memory_space<vmem>>, vector<1x2048xf32>,
    return
  }
  func.func @transform_0(%arg0: i32) -> i32 {
    %c0_i32 = arith.constant 0 : i32
    %c0_i32_0 = arith.constant 0 : i32
    return %c0_i32 : i32
  }
  func.func @transform_1(%arg0: i32) -> (i32, i32) {
    %c0_i32 = arith.constant 0 : i32
    %c0_i32_0 = arith.constant 0 : i32
    return %arg0, %c0_i32 : i32, i32
  }
  func.func @transform_2(%arg0: i32) -> (i32, i32) {
    %c0_i32 = arith.constant 0 : i32
    %c0_i32_0 = arith.constant 0 : i32
    return %arg0, %c0_i32 : i32, i32
  }
  func.func @transform_3(%arg0: i32) -> (i32, i32) {
    %c0_i32 = arith.constant 0 : i32
    %c0_i32_0 = arith.constant 0 : i32
    return %arg0, %c0_i32 : i32, i32
  }
}

</mosaic_0001>

<bundles_post_ra>
// kernel: tpu_custom_call.1
= control target key start
LH: loop header
LB: loop body
LE: loop exit
PB: predicated region body
PF: predicated region fallthrough
CT: control target
= control target key end

     0   :  { %9 = vsyncpa [#allocation4], 0  ;;  %s205_s0 = inlined_call_operand.<no memory space> [shape: f32[1], index: 0, kind: input, shape index: {}]   ;;  %s206_s1 = inlined_call_operand.hbm [shape: f32[1,2048], index: 1, kind: input, shape index: {}]   ;;  %s207_s2 = inlined_call_operand.hbm [shape: f32[1,2048], index: 2, kind: input, shape index: {}]   ;;  %s208_s3 = inlined_call_operand.hbm [shape: f32[1,2048], index: 3, kind: output, shape index: {}]  }
   0x1   :  { %10 = vsyncpa [#allocation7], 0 }
   0x2   :  { %11 = vsyncpa [#allocation5], 0  ;;  %s143_s12 = smov [#allocation3]   ;;  %s144_s14 = smov [#allocation6]  }
   0x3   :  { %s20_s13 = sshll.u32 %s143_s12, 4  ;;  %s30_s15 = sshll.u32 %s144_s14, 4  ;;  %s21_s13 = int_to_ptr.vmem [resolvable:$true] %s20_s13  ;;  %s31_s15 = int_to_ptr.vmem [resolvable:$true] %s30_s15 }
   0x4   :  { %s71_s18 = scalar_lea.hbm %s206_s1, 256 }
   0x5   :  { %p72_p0 = scmp.ne.s32.totalorder %s206_s1, %s71_s18  ;;  %p75_p1 = scmp.lt.u32.totalorder %s71_s18, %s206_s1 }
   0x7   :  { %p77_p2 = pnand %p75_p1, %p72_p0 }
   0x9   :  { %80 = shalt.err (!%p77_p2)
}
   0xa   :  { %s81_s23 = scalar_lea.vmem %s21_s13, 256  ;;  %p86_p4 = scmp.lt.s32.totalorder %s21_s13, %s21_s13 }
   0xb   :  { %p82_p3 = scmp.ne.s32.totalorder %s21_s13, %s81_s23  ;;  %p87_p5 = scmp.lt.s32.totalorder %s81_s23, %s81_s23 }
   0xd   :  { %p88_p6 = por %p87_p5, %p86_p4 }
   0xf   :  { %p89_p7 = pnand %p88_p6, %p82_p3 }
  0x11   :  { %92 = shalt.err (!%p89_p7)
}
  0x12   :  { %23 = dma.hbm_to_vmem [thread:$0]  %s206_s1, 256, %s21_s13, [#allocation4]  }
  0x13   :  { %s93_s28 = scalar_lea.hbm %s207_s2, 256 }
  0x14   :  { %p94_p8 = scmp.ne.s32.totalorder %s207_s2, %s93_s28  ;;  %p97_p9 = scmp.lt.u32.totalorder %s93_s28, %s207_s2 }
  0x16   :  { %p99_p10 = pnand %p97_p9, %p94_p8 }
  0x18   :  { %102 = shalt.err (!%p99_p10)
}
  0x19   :  { %s103_s6 = scalar_lea.vmem %s31_s15, 256  ;;  %p108_p12 = scmp.lt.s32.totalorder %s31_s15, %s31_s15 }
  0x1a   :  { %p104_p11 = scmp.ne.s32.totalorder %s31_s15, %s103_s6  ;;  %p109_p13 = scmp.lt.s32.totalorder %s103_s6, %s103_s6 }
  0x1c   :  { %p110_p0 = por %p109_p13, %p108_p12 }
  0x1e   :  { %p111_p1 = pnand %p110_p0, %p104_p11 }
  0x20   :  { %114 = shalt.err (!%p111_p1)
}
  0x21   :  { %33 = dma.hbm_to_vmem [thread:$0]  %s207_s2, 256, %s31_s15, [#allocation7]  }
  0x22   :  { %137 = dma.done.wait [#allocation4], 256  }
  0x23   :  { %138 = vsyncadd [#allocation4], 4294967040 }
  0x24   :  { %139 = dma.done.wait [#allocation7], 256  }
  0x25   :  { %140 = vsyncadd [#allocation7], 4294967040  ;;  %v45_v0 = vstv %s205_s0  ;;  %v41_v1 = vld [vmem:[#allocation3] sm:$0xff]  ;;  %v43_v2 = vld [vmem:[#allocation6] sm:$0xff]  ;;  %s145_s10 = smov [#allocation8]  }
  0x26   :  { %v46_v3 = vmul.f32 %v45_v0, %v43_v2  ;;  %v42_v4 = vld [vmem:[#allocation3 + $0x8] sm:$0xff]  ;;  %v44_v5 = vld [vmem:[#allocation6 + $0x8] sm:$0xff]  ;;  %s58_s11 = sshll.u32 %s145_s10, 4  ;;  %s59_s11 = int_to_ptr.vmem [resolvable:$true] %s58_s11 }
  0x27   :  { %v47_v6 = vmul.f32 %v45_v0, %v44_v5  ;;  %s115_s2 = scalar_lea.vmem %s59_s11, 256  ;;  %p120_p3 = scmp.lt.s32.totalorder %s59_s11, %s59_s11 }
  0x28   :  { %v48_v7 = vadd.f32 %v46_v3, %v41_v1  ;;  %p116_p2 = scmp.ne.s32.totalorder %s59_s11, %s115_s2  ;;  %p121_p4 = scmp.lt.s32.totalorder %s115_s2, %s115_s2 }
  0x29   :  { %v49_v8 = vadd.f32 %v47_v6, %v42_v4 }
  0x2a   :  { %50 = vst [vmem:[#allocation8] sm:$0xff] %v48_v7  ;;  %p122_p5 = por %p121_p4, %p120_p3 }
  0x2b   :  { %51 = vst [vmem:[#allocation8 + $0x8] sm:$0xff] %v49_v8 }
  0x2c   :  { %p123_p6 = pnand %p122_p5, %p116_p2 }
  0x2e   :  { %126 = shalt.err (!%p123_p6)
}
  0x2f   :  { %s127_s13 = scalar_lea.hbm %s208_s3, 256 }
  0x30   :  { %p128_p7 = scmp.ne.s32.totalorder %s208_s3, %s127_s13  ;;  %p131_p8 = scmp.lt.u32.totalorder %s127_s13, %s208_s3 }
  0x32   :  { %p133_p9 = pnand %p131_p8, %p128_p7 }
  0x34   :  { %136 = shalt.err (!%p133_p9)
}
  0x35   :  { %61 = dma.vmem_to_hbm [thread:$0]  %s59_s11, 256, %s208_s3, [#allocation5]  }
  0x36   :  { %141 = dma.done.wait [#allocation5], 256  }
  0x37   :  { %142 = vsyncadd [#allocation5], 4294967040 }
  0x38   :  { %65 = vsyncpa [#allocation4], 1 }
  0x39   :  { %66 = vsyncpa [#allocation7], 1 }
  0x3a   :  { %67 = vsyncpa [#allocation5], 1 }

</bundles_post_ra>
